<compile_context>
chip_gen: v6e
topology: v6e:2x2x1
jax: 0.10.0
libtpu: 0.0.40
codegen_flags: <defaults>
</compile_context>

<pallas_src>
import functools

import jax
import jax.numpy as jnp
from jax.experimental import pallas as pl
from jax.experimental.pallas import tpu as pltpu


def _layernorm_kernel(x_ref, gamma_ref, beta_ref, o_ref, *, eps, hidden):
    """Plain path: one block row == one logical row; reduce over the lane axis."""
    x = x_ref[...].astype(jnp.float32)                       # (tile_rows, H)
    mean = jnp.mean(x, axis=-1, keepdims=True)
    d = x - mean
    var_unbiased = jnp.sum(d * d, axis=-1, keepdims=True) * (1.0 / (hidden - 1))
    std = jnp.sqrt(var_unbiased)
    inv = jax.lax.rsqrt(std + eps)                            # EUP rsqrt, frees VPU
    y = d * inv
    g = gamma_ref[...].astype(jnp.float32)                    # (1, H)
    b = beta_ref[...].astype(jnp.float32)                     # (1, H)
    o_ref[...] = (y * g + b).astype(o_ref.dtype)


def _layernorm_packed_kernel(x_ref, seg_ref, gamma_ref, beta_ref, o_ref, *,
                             eps, hidden):
    """Lane-dense path for H < 128: each 128-lane row packs F = 128//H logical
    rows; the per-row reduction is a segment sum computed on the MXU with a
    block-diagonal ones matrix, so loads/stores stay full-lane."""
    x = x_ref[...].astype(jnp.float32)                        # (tile_rows, 128)
    seg = seg_ref[...]                                        # (128, 128) f32
    sums = jnp.dot(x, seg, preferred_element_type=jnp.float32)
    mean = sums * (1.0 / hidden)
    d = x - mean
    ssq = jnp.dot(d * d, seg, preferred_element_type=jnp.float32)
    std = jnp.sqrt(ssq * (1.0 / (hidden - 1)))
    inv = jax.lax.rsqrt(std + eps)
    y = d * inv
    o_ref[...] = (y * gamma_ref[...] + beta_ref[...]).astype(o_ref.dtype)


def _pick_tile_rows(rows, lanes, itemsize, max_tile_bytes, *, target_steps=8):
    """Row tile: multiple of the dtype sublane pack, within the byte budget, but
    small enough to keep >= target_steps grid steps (pipeline overlap + v7x
    megacore sharding of the 'parallel' row axis)."""
    pack = max(32 // max(itemsize, 1), 8)         # 8 f32, 16 bf16, 32 int8/fp8
    budget = max_tile_bytes // max(lanes * itemsize, 1)
    budget = max((budget // pack) * pack, pack)   # round down to pack, >= pack
    step = -(-rows // target_steps)               # cdiv
    step = -(-step // pack) * pack                # round up to pack
    return max(min(budget, step), pack)


def layer_norm(x, gamma, beta, *, eps=1e-12, tile_rows=None,
               max_tile_bytes=2 << 20):
    """x: (..., H) float array; gamma/beta: (H,). Matches the PyTorch module."""
    orig_shape = x.shape
    H = orig_shape[-1]
    x2 = x.reshape(-1, H)                          # free row-major reshape
    R = x2.shape[0]
    itemsize = jnp.dtype(x.dtype).itemsize

    # Lane-dense repack for small hidden dims (free contiguous reshape).
    fold = (H < 128) and (128 % H == 0) and (R % (128 // H) == 0)
    if fold:
        F = 128 // H
        lanes = 128
        rows = R // F
        x2 = x2.reshape(rows, lanes)               # still a free reshape
        g_row = jnp.tile(gamma.astype(jnp.float32), F).reshape(1, lanes)
        b_row = jnp.tile(beta.astype(jnp.float32), F).reshape(1, lanes)
        idx = jnp.arange(lanes) // H               # segment id per lane
        seg = (idx[:, None] == idx[None, :]).astype(jnp.float32)  # (128, 128)
    else:
        lanes = H
        rows = R
        g_row = gamma.reshape(1, H)
        b_row = beta.reshape(1, H)

    if tile_rows is None:
        tile_rows = _pick_tile_rows(rows, lanes, itemsize, max_tile_bytes)
    if tile_rows > rows:
        tile_rows = rows     # full-extent row block is always a legal block dim
    # Partial last block is fine: OOB reads are padded, OOB writes masked, and
    # rows are independent, so no wrapper pad/slice pass is needed.
    num_tiles = pl.cdiv(rows, tile_rows)

    # VMEM budget: double-buffered in/out tiles + f32 intermediates (~3 tiles,
    # the axis reductions break elementwise fusion) + resident gamma/beta/seg.
    io_tile = tile_rows * lanes * itemsize
    f32_tile = tile_rows * lanes * 4
    vmem_needed = (2 * 2 * io_tile + 3 * f32_tile + 2 * lanes * 4
                   + (lanes * lanes * 4 if fold else 0) + (1 << 20))
    vmem_limit = int(min(max(vmem_needed * 5 // 4, 16 << 20), 40 << 20))

    row_spec = pl.BlockSpec((tile_rows, lanes), lambda i: (i, 0))
    vec_spec = pl.BlockSpec((1, lanes), lambda i: (0, 0))     # resident

    if fold:
        kernel = functools.partial(_layernorm_packed_kernel, eps=eps, hidden=H)
        in_specs = [row_spec,
                    pl.BlockSpec((lanes, lanes), lambda i: (0, 0)),  # seg resident
                    vec_spec, vec_spec]
        args = (x2, seg, g_row, b_row)
    else:
        kernel = functools.partial(_layernorm_kernel, eps=eps, hidden=H)
        in_specs = [row_spec, vec_spec, vec_spec]
        args = (x2, g_row, b_row)

    # TODO(synk): add a column-tiled variant (grid over H with running sum /
    # sum-of-squares accumulators, "arbitrary" reduction axis) for hidden dims
    # so large that even pack x H x itemsize exceeds the VMEM tile budget.
    out = pl.pallas_call(
        kernel,
        out_shape=jax.ShapeDtypeStruct((rows, lanes), x.dtype),
        grid_spec=pltpu.PrefetchScalarGridSpec(
            num_scalar_prefetch=0,
            grid=(num_tiles,),
            in_specs=in_specs,
            out_specs=row_spec,
        ),
        compiler_params=pltpu.CompilerParams(
            dimension_semantics=("parallel",),
            vmem_limit_bytes=vmem_limit,
        ),
    )(*args)

    return out.reshape(orig_shape)


if __name__ == "__main__":
    key = jax.random.PRNGKey(0)
    batch, seq, hidden = 2, 8, 32

    x = jax.random.normal(key, (batch, seq, hidden), dtype=jnp.float32)
    # Deterministic params matching nn.Parameter(torch.ones/zeros(hidden_dim)).
    gamma = jnp.ones((hidden,), dtype=jnp.float32)
    beta = jnp.zeros((hidden,), dtype=jnp.float32)

    def ref_ln(xv):
        mean = jnp.mean(xv, axis=-1, keepdims=True)
        std = jnp.sqrt(jnp.sum((xv - mean) ** 2, axis=-1, keepdims=True)
                       / (xv.shape[-1] - 1))
        return gamma * ((xv - mean) / jnp.sqrt(std + 1e-12)) + beta

    # Lane-dense (packed) path: H=32 folds 4 rows per 128-lane row.
    out = jax.block_until_ready(layer_norm(x, gamma, beta, eps=1e-12))
    assert jnp.allclose(out, ref_ln(x), atol=1e-5, rtol=1e-5)

    # Non-divisible row count -> plain (unpacked) path with a partial last
    # block: exercises OOB-masked stores without any wrapper pad/slice.
    x_odd = jax.random.normal(jax.random.PRNGKey(1), (3, 7, hidden), jnp.float32)
    out_odd = jax.block_until_ready(
        layer_norm(x_odd, gamma, beta, eps=1e-12, tile_rows=16))
    assert jnp.allclose(out_odd, ref_ln(x_odd), atol=1e-5, rtol=1e-5)

    print("KERNEL_OK")
</pallas_src>

<mosaic_0001>
module attributes {stable_mosaic.version = 11 : i64} {
  func.func @_layernorm_packed_kernel(%arg0: i32, %arg1: memref<4x128xf32, #tpu.memory_space<vmem>>, %arg2: memref<128x128xf32, #tpu.memory_space<vmem>>, %arg3: memref<1x128xf32, #tpu.memory_space<vmem>>, %arg4: memref<1x128xf32, #tpu.memory_space<vmem>>, %arg5: memref<4x128xf32, #tpu.memory_space<vmem>>) attributes {dimension_semantics = [#tpu.dimension_semantics<parallel>], iteration_bounds = array<i64: 1>, scalar_prefetch = 0 : i64, scratch_operands = 0 : i64, tpu.core_type = #tpu.core_type<tc>, window_params = [{transform_indices = @transform_0, window_bounds = array<i64: 4, 128>}, {pipeline_mode = #tpu.pipeline_mode<synchronous>, transform_indices = @transform_1, window_bounds = array<i64: 128, 128>}, {pipeline_mode = #tpu.pipeline_mode<synchronous>, transform_indices = @transform_2, window_bounds = array<i64: 1, 128>}, {pipeline_mode = #tpu.pipeline_mode<synchronous>, transform_indices = @transform_3, window_bounds = array<i64: 1, 128>}, {transform_indices = @transform_4, window_bounds = array<i64: 4, 128>}]} {
    %c0 = arith.constant 0 : index
    %c0_0 = arith.constant 0 : index
    %0 = vector.load %arg1[%c0, %c0_0] : memref<4x128xf32, #tpu.memory_space<vmem>>, vector<4x128xf32>
    %c0_1 = arith.constant 0 : index
    %c0_2 = arith.constant 0 : index
    %1 = vector.load %arg2[%c0_1, %c0_2] : memref<128x128xf32, #tpu.memory_space<vmem>>, vector<128x128xf32>
    %cst = arith.constant dense<0.000000e+00> : vector<4x128xf32>
    %2 = tpu.matmul %0, %1, %cst {dimension_numbers = #tpu.dot_dimension_numbers<[1], [0], [0], [1], [0, 0, 1, 1], [], []>} : vector<4x128xf32>, vector<128x128xf32>, vector<4x128xf32> -> vector<4x128xf32>
    %cst_3 = arith.constant 3.125000e-02 : f32
    %3 = vector.broadcast %cst_3 : f32 to vector<4x128xf32>
    %4 = arith.mulf %2, %3 : vector<4x128xf32>
    %5 = arith.subf %0, %4 : vector<4x128xf32>
    %6 = arith.mulf %5, %5 : vector<4x128xf32>
    %cst_4 = arith.constant dense<0.000000e+00> : vector<4x128xf32>
    %7 = tpu.matmul %6, %1, %cst_4 {dimension_numbers = #tpu.dot_dimension_numbers<[1], [0], [0], [1], [0, 0, 1, 1], [], []>} : vector<4x128xf32>, vector<128x128xf32>, vector<4x128xf32> -> vector<4x128xf32>
    %cst_5 = arith.constant 0.0322580636 : f32
    %8 = vector.broadcast %cst_5 : f32 to vector<4x128xf32>
    %9 = arith.mulf %7, %8 : vector<4x128xf32>
    %10 = math.sqrt %9 : vector<4x128xf32>
    %cst_6 = arith.constant 9.99999996E-13 : f32
    %11 = vector.broadcast %cst_6 : f32 to vector<4x128xf32>
    %12 = arith.addf %10, %11 : vector<4x128xf32>
    %13 = math.rsqrt %12 : vector<4x128xf32>
    %14 = arith.mulf %5, %13 : vector<4x128xf32>
    %c0_7 = arith.constant 0 : index
    %c0_8 = arith.constant 0 : index
    %15 = vector.load %arg3[%c0_7, %c0_8] : memref<1x128xf32, #tpu.memory_space<vmem>>, vector<1x128xf32>
    %16 = vector.broadcast %15 : vector<1x128xf32> to vector<4x128xf32>
    %17 = arith.mulf %14, %16 : vector<4x128xf32>
    %c0_9 = arith.constant 0 : index
    %c0_10 = arith.constant 0 : index
    %18 = vector.load %arg4[%c0_9, %c0_10] : memref<1x128xf32, #tpu.memory_space<vmem>>, vector<1x128xf32>
    %19 = vector.broadcast %18 : vector<1x128xf32> to vector<4x128xf32>
    %20 = arith.addf %17, %19 : vector<4x128xf32>
    %c0_11 = arith.constant 0 : index
    %c0_12 = arith.constant 0 : index
    %21 = vector.load %arg5[%c0_11, %c0_12] : memref<4x128xf32, #tpu.memory_space<vmem>>, vector<4x128xf32>
    tpu.vector_store %arg5[%c0_11, %c0_12], %20 {strides = array<i32>} : memref<4x128xf32, #tpu.memory_space<vmem>>, vector<4x128xf32>,
    return
  }
  func.func @transform_0(%arg0: i32) -> (i32, i32) {
    %c0_i32 = arith.constant 0 : i32
    %c0_i32_0 = arith.constant 0 : i32
    return %arg0, %c0_i32 : i32, i32
  }
  func.func @transform_1(%arg0: i32) -> (i32, i32) {
    %c0_i32 = arith.constant 0 : i32
    %c0_i32_0 = arith.constant 0 : i32
    %c0_i32_1 = arith.constant 0 : i32
    return %c0_i32, %c0_i32_0 : i32, i32
  }
  func.func @transform_2(%arg0: i32) -> (i32, i32) {
    %c0_i32 = arith.constant 0 : i32
    %c0_i32_0 = arith.constant 0 : i32
    %c0_i32_1 = arith.constant 0 : i32
    return %c0_i32, %c0_i32_0 : i32, i32
  }
  func.func @transform_3(%arg0: i32) -> (i32, i32) {
    %c0_i32 = arith.constant 0 : i32
    %c0_i32_0 = arith.constant 0 : i32
    %c0_i32_1 = arith.constant 0 : i32
    return %c0_i32, %c0_i32_0 : i32, i32
  }
  func.func @transform_4(%arg0: i32) -> (i32, i32) {
    %c0_i32 = arith.constant 0 : i32
    %c0_i32_0 = arith.constant 0 : i32
    return %arg0, %c0_i32 : i32, i32
  }
}

</mosaic_0001>

<bundles_post_ra>
// kernel: tpu_custom_call.1
= control target key start
LH: loop header
LB: loop body
LE: loop exit
PB: predicated region body
PF: predicated region fallthrough
CT: control target
= control target key end

     0   :  { %9 = vsyncpa [#allocation3], 0  ;;  %s512_s0 = inlined_call_operand.hbm [shape: f32[4,128], index: 0, kind: input, shape index: {}]   ;;  %s513_s1 = inlined_call_operand.hbm [shape: f32[128,128], index: 1, kind: input, shape index: {}]   ;;  %s514_s2 = inlined_call_operand.vmem [shape: f32[1,128], index: 2, kind: input, shape index: {}]   ;;  %s515_s3 = inlined_call_operand.vmem [shape: f32[1,128], index: 3, kind: input, shape index: {}]   ;;  %s516_s4 = inlined_call_operand.hbm [shape: f32[4,128], index: 4, kind: output, shape index: {}]  }
   0x1   :  { %10 = vsyncpa [#allocation6], 0 }
   0x2   :  { %11 = vsyncpa [#allocation4], 0  ;;  %s431_s15 = smov [#allocation2]   ;;  %s432_s17 = smov [#allocation5]  }
   0x3   :  { %s18_s16 = sshll.u32 %s431_s15, 4  ;;  %s27_s18 = sshll.u32 %s432_s17, 4  ;;  %s19_s16 = int_to_ptr.vmem [resolvable:$true] %s18_s16  ;;  %s28_s18 = int_to_ptr.vmem [resolvable:$true] %s27_s18 }
   0x4   :  { %s373_s19 = scalar_lea.vmem %s19_s16, 64  ;;  %p378_p1 = scmp.lt.s32.totalorder %s19_s16, %s19_s16 }
   0x5   :  { %p374_p0 = scmp.ne.s32.totalorder %s19_s16, %s373_s19  ;;  %p379_p2 = scmp.lt.s32.totalorder %s373_s19, %s373_s19 }
   0x7   :  { %p380_p3 = por %p379_p2, %p378_p1 }
   0x9   :  { %p381_p4 = pnand %p380_p3, %p374_p0 }
   0xb   :  { %384 = shalt.err (!%p381_p4)
}
   0xc   :  { %21 = dma.hbm_to_vmem [thread:$0]  %s512_s0, 64, %s19_s16, [#allocation3]  }
   0xd   :  { %s393_s22 = scalar_lea.vmem %s28_s18, 2048  ;;  %p398_p6 = scmp.lt.s32.totalorder %s28_s18, %s28_s18 }
   0xe   :  { %p394_p5 = scmp.ne.s32.totalorder %s28_s18, %s393_s22  ;;  %p399_p7 = scmp.lt.s32.totalorder %s393_s22, %s393_s22 }
  0x10   :  { %p400_p8 = por %p399_p7, %p398_p6 }
  0x12   :  { %p401_p9 = pnand %p400_p8, %p394_p5 }
  0x14   :  { %404 = shalt.err (!%p401_p9)
}
  0x15   :  { %s433_s23 = smov 128   ;;  %s434_s24 = smov 8  }
  0x16   :  { %33 = dma.hbm_to_vmem [thread:$0]  %s513_s1, 2048, %s28_s18, [#allocation6], %s433_s23, %s433_s23, %s434_s24  }
  0x17   :  { %425 = dma.done.wait [#allocation3], 64  }
  0x18   :  { %426 = vsyncadd [#allocation3], 4294967232 }
  0x19   :  { %427 = dma.done.wait [#allocation6], 2048  }
  0x1a   :  { %428 = vsyncadd [#allocation6], 4294965248  ;;  %v435_v0 = vmov 0.0   ;;  %vm436_vm0 = vmmov 0   ;;  %v60_v1 = vld [vmem:[#allocation5 + $0x78] sm:$0xff]  ;;  %v59_v2 = vld [vmem:[#allocation5 + $0x70] sm:$0xff] }
  0x1b   :  { %284 = vmatprep.subr.mxu0 %v435_v0  ;;  %316 = vmatprep.mubr.msk.f32.mxu0 %vm436_vm0, %v435_v0  ;;  %v58_v3 = vld [vmem:[#allocation5 + $0x68] sm:$0xff]  ;;  %v57_v4 = vld [vmem:[#allocation5 + $0x60] sm:$0xff]  ;;  %v56_v5 = vld [vmem:[#allocation5 + $0x58] sm:$0xff]  ;;  %s437_s29 = smov [#allocation7]  }
  0x1c   :  { %319 = vmatprep.subr.mxu1 %v435_v0  ;;  %351 = vmatprep.mubr.msk.f32.mxu1 %vm436_vm0, %v435_v0  ;;  %v55_v6 = vld [vmem:[#allocation5 + $0x50] sm:$0xff]  ;;  %v54_v7 = vld [vmem:[#allocation5 + $0x48] sm:$0xff]  ;;  %v53_v8 = vld [vmem:[#allocation5 + $0x40] sm:$0xff]  ;;  %s238_s30 = sshll.u32 %s437_s29, 4  ;;  %s239_s30 = int_to_ptr.vmem [resolvable:$true] %s238_s30 }
  0x1d   :  { %285 = vmatpush3.msra.mxu0 %v60_v1  ;;  %320 = vmatpush3.msra.mxu1 %v60_v1  ;;  %v52_v9 = vld [vmem:[#allocation5 + $0x38] sm:$0xff]  ;;  %v51_v10 = vld [vmem:[#allocation5 + $0x30] sm:$0xff]  ;;  %v50_v11 = vld [vmem:[#allocation5 + $0x28] sm:$0xff]  ;;  %s405_s5 = scalar_lea.vmem %s239_s30, 64  ;;  %p410_p11 = scmp.lt.s32.totalorder %s239_s30, %s239_s30 }
  0x1e   :  { %286 = vmatprep.subr.mxu0 %v435_v0  ;;  %321 = vmatprep.subr.mxu1 %v435_v0  ;;  %v49_v12 = vld [vmem:[#allocation5 + $0x20] sm:$0xff]  ;;  %v48_v13 = vld [vmem:[#allocation5 + $0x18] sm:$0xff]  ;;  %v47_v14 = vld [vmem:[#allocation5 + $0x10] sm:$0xff]  ;;  %p406_p10 = scmp.ne.s32.totalorder %s239_s30, %s405_s5  ;;  %p411_p12 = scmp.lt.s32.totalorder %s405_s5, %s405_s5 }
  0x1f   :  { %287 = vmatpush3.msra.mxu0 %v59_v2  ;;  %322 = vmatpush3.msra.mxu1 %v59_v2  ;;  %v46_v15 = vld [vmem:[#allocation5 + $0x8] sm:$0xff]  ;;  %v45_v16 = vld [vmem:[#allocation5] sm:$0xff]  ;;  %v44_v17 = vld [vmem:[#allocation2] sm:$0xf] }
  0x20   :  { %288 = vmatprep.subr.mxu0 %v435_v0  ;;  %323 = vmatprep.subr.mxu1 %v435_v0  ;;  %v248_v33 = vld [vmem:[%s514_s2] ss:$0 sm:$0xff]  ;;  %p412_p13 = por %p411_p12, %p410_p11 }
  0x21   :  { %289 = vmatpush3.msra.mxu0 %v58_v3  ;;  %324 = vmatpush3.msra.mxu1 %v58_v3  ;;  %v249_v35 = vld [vmem:[%s515_s3] ss:$0 sm:$0xff] }
  0x22   :  { %290 = vmatprep.subr.mxu0 %v435_v0  ;;  %325 = vmatprep.subr.mxu1 %v435_v0  ;;  %p413_p0 = pnand %p412_p13, %p406_p10 }
  0x23   :  { %291 = vmatpush3.msra.mxu0 %v57_v4  ;;  %326 = vmatpush3.msra.mxu1 %v57_v4 }
  0x24   :  { %292 = vmatprep.subr.mxu0 %v435_v0  ;;  %327 = vmatprep.subr.mxu1 %v435_v0 }
  0x25   :  { %293 = vmatpush3.msra.mxu0 %v56_v5  ;;  %328 = vmatpush3.msra.mxu1 %v56_v5 }
  0x26   :  { %294 = vmatprep.subr.mxu0 %v435_v0  ;;  %329 = vmatprep.subr.mxu1 %v435_v0 }
  0x27   :  { %295 = vmatpush3.msra.mxu0 %v55_v6  ;;  %330 = vmatpush3.msra.mxu1 %v55_v6 }
  0x28   :  { %296 = vmatprep.subr.mxu0 %v435_v0  ;;  %331 = vmatprep.subr.mxu1 %v435_v0 }
  0x29   :  { %297 = vmatpush3.msra.mxu0 %v54_v7  ;;  %332 = vmatpush3.msra.mxu1 %v54_v7 }
  0x2a   :  { %298 = vmatprep.subr.mxu0 %v435_v0  ;;  %333 = vmatprep.subr.mxu1 %v435_v0 }
  0x2b   :  { %299 = vmatpush3.msra.mxu0 %v53_v8  ;;  %334 = vmatpush3.msra.mxu1 %v53_v8 }
  0x2c   :  { %300 = vmatprep.subr.mxu0 %v435_v0  ;;  %335 = vmatprep.subr.mxu1 %v435_v0 }
  0x2d   :  { %301 = vmatpush3.msra.mxu0 %v52_v9  ;;  %336 = vmatpush3.msra.mxu1 %v52_v9 }
  0x2e   :  { %302 = vmatprep.subr.mxu0 %v435_v0  ;;  %337 = vmatprep.subr.mxu1 %v435_v0 }
  0x2f   :  { %303 = vmatpush3.msra.mxu0 %v51_v10  ;;  %338 = vmatpush3.msra.mxu1 %v51_v10 }
  0x30   :  { %304 = vmatprep.subr.mxu0 %v435_v0  ;;  %339 = vmatprep.subr.mxu1 %v435_v0 }
  0x31   :  { %305 = vmatpush3.msra.mxu0 %v50_v11  ;;  %340 = vmatpush3.msra.mxu1 %v50_v11 }
  0x32   :  { %306 = vmatprep.subr.mxu0 %v435_v0  ;;  %341 = vmatprep.subr.mxu1 %v435_v0 }
  0x33   :  { %307 = vmatpush3.msra.mxu0 %v49_v12  ;;  %342 = vmatpush3.msra.mxu1 %v49_v12 }
  0x34   :  { %308 = vmatprep.subr.mxu0 %v435_v0  ;;  %343 = vmatprep.subr.mxu1 %v435_v0 }
  0x35   :  { %309 = vmatpush3.msra.mxu0 %v48_v13  ;;  %344 = vmatpush3.msra.mxu1 %v48_v13 }
  0x36   :  { %310 = vmatprep.subr.mxu0 %v435_v0  ;;  %345 = vmatprep.subr.mxu1 %v435_v0 }
  0x37   :  { %311 = vmatpush3.msra.mxu0 %v47_v14  ;;  %346 = vmatpush3.msra.mxu1 %v47_v14 }
  0x38   :  { %312 = vmatprep.subr.mxu0 %v435_v0  ;;  %347 = vmatprep.subr.mxu1 %v435_v0 }
  0x39   :  { %313 = vmatpush3.msra.mxu0 %v46_v15  ;;  %348 = vmatpush3.msra.mxu1 %v46_v15 }
  0x3a   :  { %314 = vmatprep.subr.mxu0 %v435_v0  ;;  %349 = vmatprep.subr.mxu1 %v435_v0 }
  0x3b   :  { %315 = vmatpush3.msra.mxu0 %v45_v16  ;;  %350 = vmatpush3.msra.mxu1 %v45_v16 }
  0x3c   :  { %317 = vmatmul.mubr.f32.vlgmr.msra.gmra.mxu0 %v44_v17 }
  0xfc   :  { %v127_v18 = vpop.f32.mrf.mxu0 }
  0xfd   :  { %v131_v19 = vmul.f32 0.03125, %v127_v18 }
  0xfe   :  { %v318_v20 = vpop.f32.mrf.mxu0 }
  0xff   :  { %v132_v21 = vsub.f32 %v44_v17, %v131_v19 }
 0x101   :  { %v133_v22 = vmul.f32 %v132_v21, %v132_v21 }
 0x103   :  { %352 = vmatmul.mubr.f32.vlgmr.msra.gmra.mxu1 %v133_v22 }
 0x1c3   :  { %v200_v23 = vpop.f32.mrf.mxu1 }
 0x1c4   :  { %v204_v24 = vmul.f32 0.032258064, %v200_v23 }
 0x1c5   :  { %v353_v25 = vpop.f32.mrf.mxu1 }
 0x1c6   :  { %361 = vrsqrt.f32 %v204_v24  ;;  %vm207_vm1 = vcmp.eq.f32.partialorder %v204_v24, inf  ;;  %v210_v28 = vand.u32 2147483648, %v204_v24  ;;  %vm209_vm2 = vcmp.eq.f32.partialorder %v204_v24, 0.0 }
 0x1d3   :  { %v362_v26 = vpop.eup %361 }
 0x1d4   :  { %v206_v27 = vmul.f32 %v362_v26, %v204_v24 }
 0x1d6   :  { %v208_v29 = vsel %vm207_vm1, %v204_v24, %v206_v27 }
 0x1d7   :  { %v211_v30 = vsel %vm209_vm2, %v210_v28, %v208_v29 }
 0x1d8   :  { %v212_v31 = vadd.f32 1e-12, %v211_v30 }
 0x1da   :  { %363 = vrsqrt.f32 %v212_v31 }
 0x1e7   :  { %v364_v32 = vpop.eup %363 }
 0x1e8   :  { %v214_v34 = vmul.f32 %v364_v32, %v132_v21 }
 0x1ea   :  { %v222_v36 = vmul.f32 %v248_v33, %v214_v34 }
 0x1ec   :  { %v230_v37 = vadd.f32 %v249_v35, %v222_v36 }
 0x1ee   :  { %231 = vst [vmem:[#allocation7] sm:$0xf] %v230_v37 }
 0x1ef   :  { %416 = shalt.err (!%p413_p0)
}
 0x1f0   :  { %241 = dma.vmem_to_hbm [thread:$0]  %s239_s30, 64, %s516_s4, [#allocation4]  }
 0x1f1   :  { %429 = dma.done.wait [#allocation4], 64  }
 0x1f2   :  { %430 = vsyncadd [#allocation4], 4294967232 }
 0x1f3   :  { %245 = vsyncpa [#allocation3], 1 }
 0x1f4   :  { %246 = vsyncpa [#allocation6], 1 }
 0x1f5   :  { %247 = vsyncpa [#allocation4], 1 }

</bundles_post_ra>
